<compile_context>
chip_gen: v6e
topology: v6e:2x2x1
jax: 0.10.0
libtpu: 0.0.40
codegen_flags: <defaults>
</compile_context>

<pallas_src>
import jax
import jax.numpy as jnp
from jax import lax
from jax.experimental import pallas as pl
from jax.experimental.pallas import tpu as pltpu

EPS = 1e-5


def _make_pass1(C_in, C_out, H, W, K, dil, pad, Lp):
    """Per-batch-element: ReLU -> depthwise dilated CDC conv -> 1x1 CDC conv,
    plus accumulation of per-channel sum / sum-sq for BatchNorm."""

    def kernel(x_ref, wd_ref, kdiff_ref, mask_ref, wp_ref, y_ref, s1_ref, s2_ref):
        # x_ref:     (1, C_in, Lp)   one batch element, NCHW flattened lane-dense
        # wd_ref:    (C_in, K*K)     depthwise weights (per channel)
        # kdiff_ref: (C_in, 1)       theta * sum of depthwise kernel (theta pre-folded)
        # mask_ref:  (K*K, Lp)       0/1 border-validity mask per tap (0 on pad lanes)
        # wp_ref:    (C_out, C_in)   (1-theta) * 1x1 conv weight ((1-theta) pre-folded)
        # y_ref:     (1, C_out, Lp)  pre-BN activations for this batch element
        # s1_ref:    (C_out, 1)      resident accumulator: per-channel sum
        # s2_ref:    (C_out, 1)      resident accumulator: per-channel sum of squares
        n = pl.program_id(0)

        @pl.when(n == 0)
        def _():
            s1_ref[...] = jnp.zeros_like(s1_ref)
            s2_ref[...] = jnp.zeros_like(s2_ref)

        r = jnp.maximum(x_ref[0], 0.0)                          # leading nn.ReLU, (C_in, Lp)

        # ---- depthwise dilated KxK conv (stride 1): XLU roll + masked VPU FMA ----
        # TODO(synk): for very large H*W the spatial plane itself must be tiled with a
        # dil*(K-1)/2 halo per block; here the full plane is resident per grid step.
        acc = jnp.zeros((C_in, Lp), jnp.float32)
        for kh in range(K):
            for kw in range(K):
                dh = kh * dil - pad                             # tap offset along H
                dw = kw * dil - pad                             # tap offset along W
                off = dh * W + dw                               # offset on the flattened plane
                t = kh * K + kw
                tap = r if off == 0 else pltpu.roll(r, shift=(-off) % Lp, axis=1)
                if dh != 0 or dw != 0:
                    tap = tap * mask_ref[t:t + 1, :]            # zero out-of-image / pad lanes
                acc = acc + tap * wd_ref[:, t:t + 1]            # per-channel tap weight
        # CDC term: out_normal - theta * conv(x, sum(W)); theta already folded into kdiff.
        cdc = acc - kdiff_ref[...] * r                          # (C_in, Lp)

        # ---- 1x1 Conv2d_cd (C_in -> C_out); for 1x1, kernel_diff == weight, so the CDC
        # output is exactly (1-theta)*conv1x1(x); the (1-theta) is folded into wp. ----
        # TODO(synk): at realistic channel counts (>=128) switch this accumulation to
        # jnp.dot on bf16 operands with f32 accumulation so it runs on the MXU.
        y = jnp.zeros((C_out, Lp), jnp.float32)
        for c in range(C_in):
            y = y + wp_ref[:, c:c + 1] * cdc[c:c + 1, :]

        y_ref[0] = y
        # BN statistics (pad lanes contribute exact zeros, so they don't bias the sums).
        s1_ref[...] = s1_ref[...] + jnp.sum(y, axis=1, keepdims=True)
        s2_ref[...] = s2_ref[...] + jnp.sum(y * y, axis=1, keepdims=True)

    return kernel


def _make_pass2(count):
    """Normalize: BatchNorm folded into per-channel scale/shift (2 full-slab VALU ops)."""
    inv_cnt = 1.0 / count

    def kernel(y_ref, s1_ref, s2_ref, g_ref, b_ref, o_ref):
        mean = s1_ref[...] * inv_cnt                            # (C_out, 1)
        var = s2_ref[...] * inv_cnt - mean * mean               # biased variance
        scale = lax.rsqrt(var + EPS) * g_ref[...]               # (C_out, 1)
        shift = b_ref[...] - mean * scale                       # (C_out, 1)
        o_ref[0] = y_ref[0] * scale + shift

    return kernel


def dilcdc_theta_pallas(x_nchw, params, cfg):
    C_in, C_out, K = cfg["C_in"], cfg["C_out"], cfg["kernel_size"]
    s, p, d, theta = cfg["stride"], cfg["padding"], cfg["dilation"], cfg["theta"]
    N, _, H, W = x_nchw.shape
    L = H * W
    Lp = ((L + 127) // 128) * 128                               # lane-dense padded width

    # Only the shape-preserving stride-1 configuration is implemented (this is also the
    # only configuration for which PyTorch's `out_normal - theta*out_diff` is
    # shape-consistent), which matches the DilCDC usage.
    assert s == 1, "stride > 1 not implemented in the fused kernel"
    assert 2 * p == d * (K - 1), "padding must center-align the dilated kernel"

    # NCHW -> lane-dense (N, C_in, H*W): pure reshape, no transpose; zero-pad lanes.
    x3 = x_nchw.reshape(N, C_in, L).astype(jnp.float32)
    if Lp != L:
        x3 = jnp.pad(x3, ((0, 0), (0, 0), (0, Lp - L)))

    wd = params["wd"].astype(jnp.float32)                       # (C_in, K, K)
    wd_rows = wd.reshape(C_in, K * K)
    # theta folded into kdiff (saves a full-slab multiply in the kernel).
    kdiff_col = (theta * jnp.sum(wd, axis=(1, 2))).reshape(C_in, 1)

    # Border-validity masks per tap (static geometry), zero on pad lanes.
    hh = jnp.arange(H).reshape(H, 1)
    ww = jnp.arange(W).reshape(1, W)
    masks = []
    for kh in range(K):
        for kw in range(K):
            dh = kh * d - p
            dw = kw * d - p
            m = (hh + dh >= 0) & (hh + dh < H) & (ww + dw >= 0) & (ww + dw < W)
            masks.append(m.reshape(1, L))
    mask_arr = jnp.concatenate(masks, axis=0).astype(jnp.float32)    # (K*K, L)
    if Lp != L:
        mask_arr = jnp.pad(mask_arr, ((0, 0), (0, Lp - L)))

    # (1 - theta) folded into the 1x1 weight (saves a full-slab multiply).
    wp = ((1.0 - theta) * params["wp"]).astype(jnp.float32)     # (C_out, C_in)
    gamma = params["gamma"].reshape(C_out, 1).astype(jnp.float32)
    beta = params["beta"].reshape(C_out, 1).astype(jnp.float32)

    # ---- pass 1: conv pipeline + BN statistics, grid over batch ("arbitrary": the
    # per-channel sum / sum-sq outputs are resident accumulators across this axis) ----
    pass1 = _make_pass1(C_in, C_out, H, W, K, d, p, Lp)
    y3, s1, s2 = pl.pallas_call(
        pass1,
        out_shape=(jax.ShapeDtypeStruct((N, C_out, Lp), jnp.float32),
                   jax.ShapeDtypeStruct((C_out, 1), jnp.float32),
                   jax.ShapeDtypeStruct((C_out, 1), jnp.float32)),
        grid=(N,),
        in_specs=[pl.BlockSpec((1, C_in, Lp), lambda n: (n, 0, 0)),
                  pl.BlockSpec((C_in, K * K), lambda n: (0, 0)),
                  pl.BlockSpec((C_in, 1), lambda n: (0, 0)),
                  pl.BlockSpec((K * K, Lp), lambda n: (0, 0)),
                  pl.BlockSpec((C_out, C_in), lambda n: (0, 0))],
        out_specs=(pl.BlockSpec((1, C_out, Lp), lambda n: (n, 0, 0)),
                   pl.BlockSpec((C_out, 1), lambda n: (0, 0)),
                   pl.BlockSpec((C_out, 1), lambda n: (0, 0))),
        compiler_params=pltpu.CompilerParams(dimension_semantics=("arbitrary",)),
    )(x3, wd_rows, kdiff_col, mask_arr, wp)

    # ---- pass 2: normalize with folded scale/shift, grid over batch ("parallel":
    # shards across the two TensorCores on v7x; no-op on v5e/v6e) ----
    # TODO(synk): for non-toy N*H*W, also tile the spatial/row axis here and size the
    # per-step VMEM working set per generation (<= ~24-28 MiB on v7x's 64 MiB VMEM,
    # larger tiles on v5e/v6e's 128 MiB), raising vmem_limit_bytes as needed.
    pass2 = _make_pass2(float(N * L))
    out3 = pl.pallas_call(
        pass2,
        out_shape=jax.ShapeDtypeStruct((N, C_out, Lp), jnp.float32),
        grid=(N,),
        in_specs=[pl.BlockSpec((1, C_out, Lp), lambda n: (n, 0, 0)),
                  pl.BlockSpec((C_out, 1), lambda n: (0, 0)),
                  pl.BlockSpec((C_out, 1), lambda n: (0, 0)),
                  pl.BlockSpec((C_out, 1), lambda n: (0, 0)),
                  pl.BlockSpec((C_out, 1), lambda n: (0, 0))],
        out_specs=pl.BlockSpec((1, C_out, Lp), lambda n: (n, 0, 0)),
        compiler_params=pltpu.CompilerParams(dimension_semantics=("parallel",)),
    )(y3, s1, s2, gamma, beta)

    out3 = out3[:, :, :L] if Lp != L else out3
    # lane-dense slab -> NCHW: pure reshape, no transpose.
    return out3.reshape(N, C_out, H, W)


# ---------------- pure-JAX reference (PyTorch semantics) ----------------
def dilcdc_theta_ref(x, params, cfg):
    C_in, C_out, K = cfg["C_in"], cfg["C_out"], cfg["kernel_size"]
    s, p, d, theta = cfg["stride"], cfg["padding"], cfg["dilation"], cfg["theta"]
    x = x.astype(jnp.float32)
    r = jnp.maximum(x, 0.0)                                      # nn.ReLU

    # Conv2d_cd #1: depthwise dilated KxK
    wd = params["wd"].astype(jnp.float32).reshape(C_in, 1, K, K)
    dn = lax.conv_dimension_numbers(r.shape, wd.shape, ("NCHW", "OIHW", "NCHW"))
    out_normal = lax.conv_general_dilated(
        r, wd, (s, s), [(p, p), (p, p)], rhs_dilation=(d, d),
        dimension_numbers=dn, feature_group_count=C_in,
        precision=lax.Precision.HIGHEST)
    kdiff = jnp.sum(wd, axis=(2, 3), keepdims=True)              # (C_in, 1, 1, 1)
    out_diff = lax.conv_general_dilated(
        r, kdiff, (s, s), [(0, 0), (0, 0)],
        dimension_numbers=dn, feature_group_count=C_in,
        precision=lax.Precision.HIGHEST)
    h1 = out_normal - theta * out_diff

    # Conv2d_cd #2: 1x1 conv; for a 1x1 kernel kernel_diff == weight, so out_diff == out_normal.
    wp = params["wp"].astype(jnp.float32).reshape(C_out, C_in, 1, 1)
    dn2 = lax.conv_dimension_numbers(h1.shape, wp.shape, ("NCHW", "OIHW", "NCHW"))
    out_normal2 = lax.conv_general_dilated(
        h1, wp, (1, 1), [(0, 0), (0, 0)], dimension_numbers=dn2,
        precision=lax.Precision.HIGHEST)
    y = out_normal2 - theta * out_normal2

    # BatchNorm2d, training-mode batch statistics (biased variance, eps = 1e-5)
    mu = jnp.mean(y, axis=(0, 2, 3), keepdims=True)
    var = jnp.mean((y - mu) ** 2, axis=(0, 2, 3), keepdims=True)
    y = (y - mu) * lax.rsqrt(var + EPS) * params["gamma"].reshape(1, C_out, 1, 1) \
        + params["beta"].reshape(1, C_out, 1, 1)
    return y


if __name__ == "__main__":
    # DilCDC_theta hyperparameters (typical dilated-CDC cell op).
    C_in, C_out = 4, 8
    kernel_size, stride, padding, dilation, theta = 3, 1, 2, 2, 0.7
    cfg = dict(C_in=C_in, C_out=C_out, kernel_size=kernel_size, stride=stride,
               padding=padding, dilation=dilation, theta=theta)

    N, H, W = 2, 16, 16
    key = jax.random.PRNGKey(0)
    kx, kd, kp, kg, kb = jax.random.split(key, 5)
    x = jax.random.normal(kx, (N, C_in, H, W), jnp.float32)      # NCHW like PyTorch

    params = {
        # depthwise Conv2d_cd weight: torch (C_in, 1, K, K) stored here as (C_in, K, K)
        "wd": 0.3 * jax.random.normal(kd, (C_in, kernel_size, kernel_size), jnp.float32),
        # 1x1 Conv2d_cd weight: torch (C_out, C_in, 1, 1) stored here as (C_out, C_in)
        "wp": 0.3 * jax.random.normal(kp, (C_out, C_in), jnp.float32),
        # BatchNorm affine params (PyTorch default init is ones/zeros; randomized
        # deterministically here to exercise the affine path)
        "gamma": 1.0 + 0.1 * jax.random.normal(kg, (C_out,), jnp.float32),
        "beta": 0.1 * jax.random.normal(kb, (C_out,), jnp.float32),
    }

    out = jax.block_until_ready(dilcdc_theta_pallas(x, params, cfg))
    ref = jax.block_until_ready(dilcdc_theta_ref(x, params, cfg))

    assert out.shape == ref.shape, (out.shape, ref.shape)
    assert jnp.allclose(out, ref, rtol=1e-3, atol=1e-3), \
        f"max abs err = {jnp.max(jnp.abs(out - ref))}"

    # TODO(synk): PyTorch training-mode BatchNorm also updates running_mean/var
    # buffers as a side effect; those stateful buffer updates are not materialized.
    print("KERNEL_OK")
</pallas_src>

<mosaic_0001>
module attributes {stable_mosaic.version = 11 : i64} {
  func.func @kernel(%arg0: i32, %arg1: memref<1x4x256xf32, #tpu.memory_space<vmem>>, %arg2: memref<4x9xf32, #tpu.memory_space<vmem>>, %arg3: memref<4x1xf32, #tpu.memory_space<vmem>>, %arg4: memref<9x256xf32, #tpu.memory_space<vmem>>, %arg5: memref<8x4xf32, #tpu.memory_space<vmem>>, %arg6: memref<1x8x256xf32, #tpu.memory_space<vmem>>, %arg7: memref<8x1xf32, #tpu.memory_space<vmem>>, %arg8: memref<8x1xf32, #tpu.memory_space<vmem>>) attributes {dimension_semantics = [#tpu.dimension_semantics<arbitrary>], iteration_bounds = array<i64: 2>, scalar_prefetch = 0 : i64, scratch_operands = 0 : i64, tpu.core_type = #tpu.core_type<tc>, window_params = [{transform_indices = @transform_0, window_bounds = array<i64: 1, 4, 256>}, {pipeline_mode = #tpu.pipeline_mode<synchronous>, transform_indices = @transform_1, window_bounds = array<i64: 4, 9>}, {pipeline_mode = #tpu.pipeline_mode<synchronous>, transform_indices = @transform_2, window_bounds = array<i64: 4, 1>}, {pipeline_mode = #tpu.pipeline_mode<synchronous>, transform_indices = @transform_3, window_bounds = array<i64: 9, 256>}, {pipeline_mode = #tpu.pipeline_mode<synchronous>, transform_indices = @transform_4, window_bounds = array<i64: 8, 4>}, {transform_indices = @transform_5, window_bounds = array<i64: 1, 8, 256>}, {pipeline_mode = #tpu.pipeline_mode<synchronous>, transform_indices = @transform_6, window_bounds = array<i64: 8, 1>}, {pipeline_mode = #tpu.pipeline_mode<synchronous>, transform_indices = @transform_7, window_bounds = array<i64: 8, 1>}]} {
    %c0_i32 = arith.constant 0 : i32
    %0 = arith.cmpi eq, %arg0, %c0_i32 : i32
    %1 = arith.extui %0 : i1 to i32
    %c0_i32_0 = arith.constant 0 : i32
    %2 = arith.cmpi ne, %1, %c0_i32_0 : i32
    scf.if %2 {
      %cst_54 = arith.constant 0.000000e+00 : f32
      %119 = vector.broadcast %cst_54 : f32 to vector<8x1xf32>
      %c0_55 = arith.constant 0 : index
      %c0_56 = arith.constant 0 : index
      %120 = vector.load %arg7[%c0_55, %c0_56] : memref<8x1xf32, #tpu.memory_space<vmem>>, vector<8x1xf32>
      tpu.vector_store %arg7[%c0_55, %c0_56], %119 {strides = array<i32>} : memref<8x1xf32, #tpu.memory_space<vmem>>, vector<8x1xf32>,
      %cst_57 = arith.constant 0.000000e+00 : f32
      %121 = vector.broadcast %cst_57 : f32 to vector<8x1xf32>
      %c0_58 = arith.constant 0 : index
      %c0_59 = arith.constant 0 : index
      %122 = vector.load %arg8[%c0_58, %c0_59] : memref<8x1xf32, #tpu.memory_space<vmem>>, vector<8x1xf32>
      tpu.vector_store %arg8[%c0_58, %c0_59], %121 {strides = array<i32>} : memref<8x1xf32, #tpu.memory_space<vmem>>, vector<8x1xf32>,
    } else {
    }
    %c0 = arith.constant 0 : index
    %c0_1 = arith.constant 0 : index
    %c0_2 = arith.constant 0 : index
    %3 = vector.load %arg1[%c0, %c0_1, %c0_2] : memref<1x4x256xf32, #tpu.memory_space<vmem>>, vector<1x4x256xf32>
    %4 = vector.shape_cast %3 : vector<1x4x256xf32> to vector<4x256xf32>
    %cst = arith.constant 0.000000e+00 : f32
    %5 = vector.broadcast %cst : f32 to vector<4x256xf32>
    %6 = arith.maximumf %4, %5 : vector<4x256xf32>
    %cst_3 = arith.constant 0.000000e+00 : f32
    %7 = vector.broadcast %cst_3 : f32 to vector<4x256xf32>
    %c34_i32 = arith.constant 34 : i32
    %8 = tpu.dynamic_rotate %6 by %c34_i32 dim 1 : vector<4x256xf32>, i32 -> vector<4x256xf32>
    %c0_4 = arith.constant 0 : index
    %c0_5 = arith.constant 0 : index
    %9 = vector.load %arg4[%c0_4, %c0_5] : memref<9x256xf32, #tpu.memory_space<vmem>>, vector<1x256xf32>
    %10 = vector.broadcast %9 : vector<1x256xf32> to vector<4x256xf32>
    %11 = arith.mulf %8, %10 : vector<4x256xf32>
    %c0_6 = arith.constant 0 : index
    %c0_7 = arith.constant 0 : index
    %12 = vector.load %arg2[%c0_6, %c0_7] : memref<4x9xf32, #tpu.memory_space<vmem>>, vector<4x1xf32>
    %13 = vector.broadcast %12 : vector<4x1xf32> to vector<4x256xf32>
    %14 = arith.mulf %11, %13 : vector<4x256xf32>
    %15 = arith.addf %7, %14 : vector<4x256xf32>
    %c32_i32 = arith.constant 32 : i32
    %16 = tpu.dynamic_rotate %6 by %c32_i32 dim 1 : vector<4x256xf32>, i32 -> vector<4x256xf32>
    %c1 = arith.constant 1 : index
    %c0_8 = arith.constant 0 : index
    %17 = vector.load %arg4[%c1, %c0_8] : memref<9x256xf32, #tpu.memory_space<vmem>>, vector<1x256xf32>
    %18 = vector.broadcast %17 : vector<1x256xf32> to vector<4x256xf32>
    %19 = arith.mulf %16, %18 : vector<4x256xf32>
    %c0_9 = arith.constant 0 : index
    %c1_10 = arith.constant 1 : index
    %20 = vector.load %arg2[%c0_9, %c1_10] : memref<4x9xf32, #tpu.memory_space<vmem>>, vector<4x1xf32>
    %21 = vector.broadcast %20 : vector<4x1xf32> to vector<4x256xf32>
    %22 = arith.mulf %19, %21 : vector<4x256xf32>
    %23 = arith.addf %15, %22 : vector<4x256xf32>
    %c30_i32 = arith.constant 30 : i32
    %24 = tpu.dynamic_rotate %6 by %c30_i32 dim 1 : vector<4x256xf32>, i32 -> vector<4x256xf32>
    %c2 = arith.constant 2 : index
    %c0_11 = arith.constant 0 : index
    %25 = vector.load %arg4[%c2, %c0_11] : memref<9x256xf32, #tpu.memory_space<vmem>>, vector<1x256xf32>
    %26 = vector.broadcast %25 : vector<1x256xf32> to vector<4x256xf32>
    %27 = arith.mulf %24, %26 : vector<4x256xf32>
    %c0_12 = arith.constant 0 : index
    %c2_13 = arith.constant 2 : index
    %28 = vector.load %arg2[%c0_12, %c2_13] : memref<4x9xf32, #tpu.memory_space<vmem>>, vector<4x1xf32>
    %29 = vector.broadcast %28 : vector<4x1xf32> to vector<4x256xf32>
    %30 = arith.mulf %27, %29 : vector<4x256xf32>
    %31 = arith.addf %23, %30 : vector<4x256xf32>
    %c2_i32 = arith.constant 2 : i32
    %32 = tpu.dynamic_rotate %6 by %c2_i32 dim 1 : vector<4x256xf32>, i32 -> vector<4x256xf32>
    %c3 = arith.constant 3 : index
    %c0_14 = arith.constant 0 : index
    %33 = vector.load %arg4[%c3, %c0_14] : memref<9x256xf32, #tpu.memory_space<vmem>>, vector<1x256xf32>
    %34 = vector.broadcast %33 : vector<1x256xf32> to vector<4x256xf32>
    %35 = arith.mulf %32, %34 : vector<4x256xf32>
    %c0_15 = arith.constant 0 : index
    %c3_16 = arith.constant 3 : index
    %36 = vector.load %arg2[%c0_15, %c3_16] : memref<4x9xf32, #tpu.memory_space<vmem>>, vector<4x1xf32>
    %37 = vector.broadcast %36 : vector<4x1xf32> to vector<4x256xf32>
    %38 = arith.mulf %35, %37 : vector<4x256xf32>
    %39 = arith.addf %31, %38 : vector<4x256xf32>
    %c0_17 = arith.constant 0 : index
    %c4 = arith.constant 4 : index
    %40 = vector.load %arg2[%c0_17, %c4] : memref<4x9xf32, #tpu.memory_space<vmem>>, vector<4x1xf32>
    %41 = vector.broadcast %40 : vector<4x1xf32> to vector<4x256xf32>
    %42 = arith.mulf %6, %41 : vector<4x256xf32>
    %43 = arith.addf %39, %42 : vector<4x256xf32>
    %c254_i32 = arith.constant 254 : i32
    %44 = tpu.dynamic_rotate %6 by %c254_i32 dim 1 : vector<4x256xf32>, i32 -> vector<4x256xf32>
    %c5 = arith.constant 5 : index
    %c0_18 = arith.constant 0 : index
    %45 = vector.load %arg4[%c5, %c0_18] : memref<9x256xf32, #tpu.memory_space<vmem>>, vector<1x256xf32>
    %46 = vector.broadcast %45 : vector<1x256xf32> to vector<4x256xf32>
    %47 = arith.mulf %44, %46 : vector<4x256xf32>
    %c0_19 = arith.constant 0 : index
    %c5_20 = arith.constant 5 : index
    %48 = vector.load %arg2[%c0_19, %c5_20] : memref<4x9xf32, #tpu.memory_space<vmem>>, vector<4x1xf32>
    %49 = vector.broadcast %48 : vector<4x1xf32> to vector<4x256xf32>
    %50 = arith.mulf %47, %49 : vector<4x256xf32>
    %51 = arith.addf %43, %50 : vector<4x256xf32>
    %c226_i32 = arith.constant 226 : i32
    %52 = tpu.dynamic_rotate %6 by %c226_i32 dim 1 : vector<4x256xf32>, i32 -> vector<4x256xf32>
    %c6 = arith.constant 6 : index
    %c0_21 = arith.constant 0 : index
    %53 = vector.load %arg4[%c6, %c0_21] : memref<9x256xf32, #tpu.memory_space<vmem>>, vector<1x256xf32>
    %54 = vector.broadcast %53 : vector<1x256xf32> to vector<4x256xf32>
    %55 = arith.mulf %52, %54 : vector<4x256xf32>
    %c0_22 = arith.constant 0 : index
    %c6_23 = arith.constant 6 : index
    %56 = vector.load %arg2[%c0_22, %c6_23] : memref<4x9xf32, #tpu.memory_space<vmem>>, vector<4x1xf32>
    %57 = vector.broadcast %56 : vector<4x1xf32> to vector<4x256xf32>
    %58 = arith.mulf %55, %57 : vector<4x256xf32>
    %59 = arith.addf %51, %58 : vector<4x256xf32>
    %c224_i32 = arith.constant 224 : i32
    %60 = tpu.dynamic_rotate %6 by %c224_i32 dim 1 : vector<4x256xf32>, i32 -> vector<4x256xf32>
    %c7 = arith.constant 7 : index
    %c0_24 = arith.constant 0 : index
    %61 = vector.load %arg4[%c7, %c0_24] : memref<9x256xf32, #tpu.memory_space<vmem>>, vector<1x256xf32>
    %62 = vector.broadcast %61 : vector<1x256xf32> to vector<4x256xf32>
    %63 = arith.mulf %60, %62 : vector<4x256xf32>
    %c0_25 = arith.constant 0 : index
    %c7_26 = arith.constant 7 : index
    %64 = vector.load %arg2[%c0_25, %c7_26] : memref<4x9xf32, #tpu.memory_space<vmem>>, vector<4x1xf32>
    %65 = vector.broadcast %64 : vector<4x1xf32> to vector<4x256xf32>
    %66 = arith.mulf %63, %65 : vector<4x256xf32>
    %67 = arith.addf %59, %66 : vector<4x256xf32>
    %c222_i32 = arith.constant 222 : i32
    %68 = tpu.dynamic_rotate %6 by %c222_i32 dim 1 : vector<4x256xf32>, i32 -> vector<4x256xf32>
    %c8 = arith.constant 8 : index
    %c0_27 = arith.constant 0 : index
    %69 = vector.load %arg4[%c8, %c0_27] : memref<9x256xf32, #tpu.memory_space<vmem>>, vector<1x256xf32>
    %70 = vector.broadcast %69 : vector<1x256xf32> to vector<4x256xf32>
    %71 = arith.mulf %68, %70 : vector<4x256xf32>
    %c0_28 = arith.constant 0 : index
    %c8_29 = arith.constant 8 : index
    %72 = vector.load %arg2[%c0_28, %c8_29] : memref<4x9xf32, #tpu.memory_space<vmem>>, vector<4x1xf32>
    %73 = vector.broadcast %72 : vector<4x1xf32> to vector<4x256xf32>
    %74 = arith.mulf %71, %73 : vector<4x256xf32>
    %75 = arith.addf %67, %74 : vector<4x256xf32>
    %c0_30 = arith.constant 0 : index
    %c0_31 = arith.constant 0 : index
    %76 = vector.load %arg3[%c0_30, %c0_31] : memref<4x1xf32, #tpu.memory_space<vmem>>, vector<4x1xf32>
    %77 = vector.broadcast %76 : vector<4x1xf32> to vector<4x256xf32>
    %78 = arith.mulf %77, %6 : vector<4x256xf32>
    %79 = arith.subf %75, %78 : vector<4x256xf32>
    %cst_32 = arith.constant 0.000000e+00 : f32
    %80 = vector.broadcast %cst_32 : f32 to vector<8x256xf32>
    %c0_33 = arith.constant 0 : index
    %c0_34 = arith.constant 0 : index
    %81 = vector.load %arg5[%c0_33, %c0_34] : memref<8x4xf32, #tpu.memory_space<vmem>>, vector<8x1xf32>
    %82 = vector.extract_strided_slice %79 {offsets = [0, 0], sizes = [1, 256], strides = [1, 1]} : vector<4x256xf32> to vector<1x256xf32>
    %83 = vector.broadcast %81 : vector<8x1xf32> to vector<8x256xf32>
    %84 = vector.broadcast %82 : vector<1x256xf32> to vector<8x256xf32>
    %85 = arith.mulf %83, %84 : vector<8x256xf32>
    %86 = arith.addf %80, %85 : vector<8x256xf32>
    %c0_35 = arith.constant 0 : index
    %c1_36 = arith.constant 1 : index
    %87 = vector.load %arg5[%c0_35, %c1_36] : memref<8x4xf32, #tpu.memory_space<vmem>>, vector<8x1xf32>
    %88 = vector.extract_strided_slice %79 {offsets = [1, 0], sizes = [1, 256], strides = [1, 1]} : vector<4x256xf32> to vector<1x256xf32>
    %89 = vector.broadcast %87 : vector<8x1xf32> to vector<8x256xf32>
    %90 = vector.broadcast %88 : vector<1x256xf32> to vector<8x256xf32>
    %91 = arith.mulf %89, %90 : vector<8x256xf32>
    %92 = arith.addf %86, %91 : vector<8x256xf32>
    %c0_37 = arith.constant 0 : index
    %c2_38 = arith.constant 2 : index
    %93 = vector.load %arg5[%c0_37, %c2_38] : memref<8x4xf32, #tpu.memory_space<vmem>>, vector<8x1xf32>
    %94 = vector.extract_strided_slice %79 {offsets = [2, 0], sizes = [1, 256], strides = [1, 1]} : vector<4x256xf32> to vector<1x256xf32>
    %95 = vector.broadcast %93 : vector<8x1xf32> to vector<8x256xf32>
    %96 = vector.broadcast %94 : vector<1x256xf32> to vector<8x256xf32>
    %97 = arith.mulf %95, %96 : vector<8x256xf32>
    %98 = arith.addf %92, %97 : vector<8x256xf32>
    %c0_39 = arith.constant 0 : index
    %c3_40 = arith.constant 3 : index
    %99 = vector.load %arg5[%c0_39, %c3_40] : memref<8x4xf32, #tpu.memory_space<vmem>>, vector<8x1xf32>
    %100 = vector.extract_strided_slice %79 {offsets = [3, 0], sizes = [1, 256], strides = [1, 1]} : vector<4x256xf32> to vector<1x256xf32>
    %101 = vector.broadcast %99 : vector<8x1xf32> to vector<8x256xf32>
    %102 = vector.broadcast %100 : vector<1x256xf32> to vector<8x256xf32>
    %103 = arith.mulf %101, %102 : vector<8x256xf32>
    %104 = arith.addf %98, %103 : vector<8x256xf32>
    %c0_41 = arith.constant 0 : index
    %c0_42 = arith.constant 0 : index
    %c0_43 = arith.constant 0 : index
    %105 = vector.load %arg6[%c0_41, %c0_42, %c0_43] : memref<1x8x256xf32, #tpu.memory_space<vmem>>, vector<1x8x256xf32>
    %106 = vector.shape_cast %105 : vector<1x8x256xf32> to vector<8x256xf32>
    %107 = vector.shape_cast %104 : vector<8x256xf32> to vector<1x8x256xf32>
    tpu.vector_store %arg6[%c0_41, %c0_42, %c0_43], %107 {strides = array<i32>} : memref<1x8x256xf32, #tpu.memory_space<vmem>>, vector<1x8x256xf32>,
    %c0_44 = arith.constant 0 : index
    %c0_45 = arith.constant 0 : index
    %108 = vector.load %arg7[%c0_44, %c0_45] : memref<8x1xf32, #tpu.memory_space<vmem>>, vector<8x1xf32>
    %cst_46 = arith.constant dense<0.000000e+00> : vector<8xf32>
    %109 = vector.multi_reduction <add>, %104, %cst_46 [1] : vector<8x256xf32> to vector<8xf32>
    %110 = vector.shape_cast %109 : vector<8xf32> to vector<8x1xf32>
    %111 = arith.addf %108, %110 : vector<8x1xf32>
    %c0_47 = arith.constant 0 : index
    %c0_48 = arith.constant 0 : index
    %112 = vector.load %arg7[%c0_47, %c0_48] : memref<8x1xf32, #tpu.memory_space<vmem>>, vector<8x1xf32>
    tpu.vector_store %arg7[%c0_47, %c0_48], %111 {strides = array<i32>} : memref<8x1xf32, #tpu.memory_space<vmem>>, vector<8x1xf32>,
    %c0_49 = arith.constant 0 : index
    %c0_50 = arith.constant 0 : index
    %113 = vector.load %arg8[%c0_49, %c0_50] : memref<8x1xf32, #tpu.memory_space<vmem>>, vector<8x1xf32>
    %114 = arith.mulf %104, %104 : vector<8x256xf32>
    %cst_51 = arith.constant dense<0.000000e+00> : vector<8xf32>
    %115 = vector.multi_reduction <add>, %114, %cst_51 [1] : vector<8x256xf32> to vector<8xf32>
    %116 = vector.shape_cast %115 : vector<8xf32> to vector<8x1xf32>
    %117 = arith.addf %113, %116 : vector<8x1xf32>
    %c0_52 = arith.constant 0 : index
    %c0_53 = arith.constant 0 : index
    %118 = vector.load %arg8[%c0_52, %c0_53] : memref<8x1xf32, #tpu.memory_space<vmem>>, vector<8x1xf32>
    tpu.vector_store %arg8[%c0_52, %c0_53], %117 {strides = array<i32>} : memref<8x1xf32, #tpu.memory_space<vmem>>, vector<8x1xf32>,
    return
  }
  func.func @transform_0(%arg0: i32) -> (i32, i32, i32) {
    %c0_i32 = arith.constant 0 : i32
    %c0_i32_0 = arith.constant 0 : i32
    %c0_i32_1 = arith.constant 0 : i32
    return %arg0, %c0_i32, %c0_i32_0 : i32, i32, i32
  }
  func.func @transform_1(%arg0: i32) -> (i32, i32) {
    %c0_i32 = arith.constant 0 : i32
    %c0_i32_0 = arith.constant 0 : i32
    %c0_i32_1 = arith.constant 0 : i32
    return %c0_i32, %c0_i32_0 : i32, i32
  }
  func.func @transform_2(%arg0: i32) -> (i32, i32) {
    %c0_i32 = arith.constant 0 : i32
    %c0_i32_0 = arith.constant 0 : i32
    %c0_i32_1 = arith.constant 0 : i32
    return %c0_i32, %c0_i32_0 : i32, i32
  }
  func.func @transform_3(%arg0: i32) -> (i32, i32) {
    %c0_i32 = arith.constant 0 : i32
    %c0_i32_0 = arith.constant 0 : i32
    %c0_i32_1 = arith.constant 0 : i32
    return %c0_i32, %c0_i32_0 : i32, i32
  }
  func.func @transform_4(%arg0: i32) -> (i32, i32) {
    %c0_i32 = arith.constant 0 : i32
    %c0_i32_0 = arith.constant 0 : i32
    %c0_i32_1 = arith.constant 0 : i32
    return %c0_i32, %c0_i32_0 : i32, i32
  }
  func.func @transform_5(%arg0: i32) -> (i32, i32, i32) {
    %c0_i32 = arith.constant 0 : i32
    %c0_i32_0 = arith.constant 0 : i32
    %c0_i32_1 = arith.constant 0 : i32
    return %arg0, %c0_i32, %c0_i32_0 : i32, i32, i32
  }
  func.func @transform_6(%arg0: i32) -> (i32, i32) {
    %c0_i32 = arith.constant 0 : i32
    %c0_i32_0 = arith.constant 0 : i32
    %c0_i32_1 = arith.constant 0 : i32
    return %c0_i32, %c0_i32_0 : i32, i32
  }
  func.func @transform_7(%arg0: i32) -> (i32, i32) {
    %c0_i32 = arith.constant 0 : i32
    %c0_i32_0 = arith.constant 0 : i32
    %c0_i32_1 = arith.constant 0 : i32
    return %c0_i32, %c0_i32_0 : i32, i32
  }
}

</mosaic_0001>

<bundles_post_ra>
// kernel: tpu_custom_call.1
= control target key start
LH: loop header
LB: loop body
LE: loop exit
PB: predicated region body
PF: predicated region fallthrough
CT: control target
= control target key end

     0   :  { %13 = vsyncpa [#allocation3], 0  ;;  %s1353_s0 = inlined_call_operand.vmem [shape: f32[2,4,256], index: 0, kind: input, shape index: {}]   ;;  %s1354_s1 = inlined_call_operand.hbm [shape: f32[4,9], index: 1, kind: input, shape index: {}]   ;;  %s1355_s2 = inlined_call_operand.vmem [shape: f32[4,1], index: 2, kind: input, shape index: {}]   ;;  %s1356_s3 = inlined_call_operand.hbm [shape: f32[9,256], index: 3, kind: input, shape index: {}]   ;;  %s1357_s4 = inlined_call_operand.vmem [shape: f32[8,4], index: 4, kind: input, shape index: {}]   ;;  %s1358_s5 = inlined_call_operand.hbm [shape: f32[2,8,256], index: 5, kind: output, shape index: {0}]   ;;  %s1359_s6 = inlined_call_operand.vmem [shape: f32[8,1], index: 6, kind: output, shape index: {1}]   ;;  %s1360_s7 = inlined_call_operand.vmem [shape: f32[8,1], index: 7, kind: output, shape index: {2}]  }
   0x1   :  { %14 = vsyncpa [#allocation6], 0 }
   0x2   :  { %15 = vsyncpa [#allocation4], 0 }
   0x3   :  { %17 = vsyncpa [#allocation4 + $0x1], 0  ;;  %s1088_s24 = smov 0   ;;  %s1090_s25 = smov 0  }
   0x4   :  { %s1092_s26 = smov 0   ;;  %s1094_s27 = smov 0  }
   0x5 LB: > { %s1109_s28 = sadd.s32 4294967295, %s1022_s27   ;;  %s787_s29 = sadd.s32 4294967294, %s1022_s27   ;;  %s1022_s27 = sphi %s1094_s27, %s1379_s27   ;;  %s1018_s26 = sphi %s1092_s26, %s1378_s26   ;;  %s1014_s25 = sphi %s1090_s25, %s1377_s25   ;;  %s1010_s24 = sphi %s1088_s24, %s1376_s24  }
   0x6   : > { %s1113_s30 = sadd.s32 1, %s1022_s27   ;;  %s140_s8 = sadd.s32 1, %s1018_s26 }
   0x7   : > { %s137_s9 = ssub.s32 %s1022_s27, %s1113_s30  ;;  %p150_p0 = scmp.ne.s32.totalorder %s1018_s26, %s1014_s25 }
   0x8   : > { %p138_p1 = scmp.eq.s32.totalorder %s137_s9, 0  ;;  %p151_p2 = scmp.eq.s32.totalorder %s1109_s28, 1 }
   0x9   : > { %p156_p3 = scmp.ne.s32.totalorder %s1014_s25, %s1010_s24  ;;  %p157_p4 = scmp.eq.s32.totalorder %s787_s29, 1 }
   0xa   : > { %s1124_s10 = scalar_select %p138_p1, %s1018_s26, %s140_s8  }
   0xb   : > { %p1126_p5 = por %p151_p2, %p150_p0  ;;  %p1130_p6 = por %p157_p4, %p156_p3 }
   0xc   : > { %p788_p7 = scmp.ge.s32.totalorder %s1022_s27, 1  ;;  %p206_p8 = scmp.lt.s32.totalorder %s1022_s27, 3 }
   0xd   : > { %s1364_s11 = scalar_select %p1126_p5, 1, 0 }
   0xe   : > { %s1365_s12 = scalar_select %p1130_p6, 1, 0 }
   0xf   : > { %p1361_p10 = scmp.eq.s32.totalorder %s1109_s28, 0  ;;  %p1138_p11 = pnand %p788_p7, %p206_p8 }
  0x10   : > { %s1024_s14 = smov [#allocation2]   ;;  %s1025_s16 = smov [#allocation5]  }
  0x11   : > { %s1366_s13 = scalar_select %p1138_p11, 1, 0 }
  0x12   : > { %s219_s15 = sshll.u32 %s1024_s14, 4  ;;  %p816_p12 = pneg %p1138_p11  ;;  %s220_s15 = int_to_ptr.vmem [resolvable:$true] %s219_s15 }
  0x13   : > { %s232_s17 = sshll.u32 %s1025_s16, 4  ;;  %s913_s19 = scalar_lea.vmem %s220_s15, 64  ;;  %s233_s17 = int_to_ptr.vmem [resolvable:$true] %s232_s17 }
  0x14   : > { %p1146_p13 = pnand %p1361_p10, %p816_p12  ;;  %p914_p1 = scmp.ne.s32.totalorder %s220_s15, %s913_s19 }
  0x15   : > { %p921_p4 = scmp.lt.s32.totalorder %s220_s15, %s220_s15  ;;  %p922_p7 = scmp.lt.s32.totalorder %s913_s19, %s913_s19 }
  0x16   : > { %p904_p0 = pneg %p1146_p13 }
  0x17   : > { %p923_p8 = por %p922_p7, %p921_p4 }
  0x18   : > { %p916_p2 = pnand %p914_p1, %p904_p0 }
  0x1a   : > { %p917_p3 = pneg %p916_p2 }
  0x1c   : > { %p924_p9 = pnand %p923_p8, %p917_p3 }
  0x1e   : > { %927 = shalt.err (!%p924_p9)
}
  0x1f   : > { %819 = dma.hbm_to_vmem [thread:$0]  (!%p1146_p13), %s1354_s1, 64, %s220_s15, [#allocation3]  }
  0x20   : > { %s939_s22 = scalar_lea.vmem %s233_s17, 512  ;;  %p947_p1 = scmp.lt.s32.totalorder %s233_s17, %s233_s17 }
  0x21   : > { %p940_p12 = scmp.ne.s32.totalorder %s233_s17, %s939_s22  ;;  %p948_p2 = scmp.lt.s32.totalorder %s939_s22, %s939_s22 }
  0x23   : > { %p942_p10 = pnand %p940_p12, %p904_p0  ;;  %p949_p5 = por %p948_p2, %p947_p1 }
  0x25   : > { %p943_p6 = pneg %p942_p10 }
  0x27   : > { %p950_p11 = pnand %p949_p5, %p943_p6 }
  0x29   : > { %953 = shalt.err (!%p950_p11)
}
  0x2a   : > { %s1026_s23 = smov 256   ;;  %s1027_s29 = smov 16  }
  0x2b   : > { %822 = dma.hbm_to_vmem [thread:$0]  (!%p1146_p13), %s1356_s3, 512, %s233_s17, [#allocation6], %s1026_s23, %s1026_s23, %s1027_s29  }
  0x2c   : > { %p1368_p9 = scmp.ne.s32.totalorder %s1366_s13, 0 }
  0x2d   : > { %p1369_p3 = scmp.eq.s32.totalorder (!%p1368_p9), %s1109_s28, 0 }
  0x2e   : > { %259 = sbr.rel (%p1368_p9) target bundleno = 417 (0x1a1), region = 40 }
  0x33   : > { %997 = dma.done.wait (%p1369_p3), [#allocation3], 64   ;;  %p1370_p10 = pmov %p1369_p3 }
  0x34   : > { %p1371_p5 = pmov %p1369_p3 }
  0x35   : > { %999 = vsyncadd (%p1370_p10), [#allocation3], 4294967232 }
  0x36   : > { %1001 = dma.done.wait (%p1371_p5), [#allocation6], 512   ;;  %p1372_p6 = pmov %p1369_p3 }
  0x37   : > { %s288_s14 = sand.u32 1, %s1014_s25   ;;  %p295_p11 = scmp.lt.s32.totalorder %s1109_s28, 1 }
  0x38   : > { %1003 = vsyncadd (%p1372_p6), [#allocation6], 4294966784  ;;  %s795_s13 = sshll.u32 %s288_s14, 4  ;;  %p1373_p13 = scmp.ne.s32.totalorder %s1109_s28, 0 }
  0x39   : > { %s296_s15 = scalar_select %p295_p11, %s1109_s28, 1 }
  0x3a   : > { %s1186_s20 = scalar_lea.vmem [#allocation7], %s795_s13  ;;  %303 = sbr.rel (%p1373_p13) target bundleno = 65 (0x41), region = 52 }
  0x3b   : > { %s804_s16 = sshll.u32 %s296_s15, 3 }
  0x3c   : > { %s299_s19 = scalar_lea.vmem %s1353_s0, %s804_s16 }
  0x3f   : > { %vm304_vm0 = vcmask 7168   ;;  %v1028_v0 = vmov 0.0  }
  0x40   : > { %305 = vst.msk [vmem:[%s1359_s6] sm:$0xff] %vm304_vm0, %v1028_v0  ;;  %306 = vst.msk [vmem:[%s1360_s7] sm:$0xff] %vm304_vm0, %v1028_v0 }
  0x41 PF: > { %v335_v1 = vld [vmem:[#allocation2] sm:$0xf]  ;;  %v1029_v3 = vmov 0   ;;  %v1030_v5 = vmov 2   ;;  %s1031_s8 = smov 34   ;;  %v1032_v8 = vmov 1   ;;  %v316_v33 = vlaneseq }
  0x42   : > { %v307_v2 = vld [vmem:[%s299_s19] sm:$0xff]  ;;  %887 = vset.pattern.permute.xlu0 %v1029_v3  ;;  %889 = vset.pattern.permute.xlu1 %v1030_v5  ;;  %s1033_s9 = smov 32   ;;  %v1034_v10 = vmov 4   ;;  %s1035_s13 = smov 30   ;;  %v1036_v12 = vmov 3   ;;  %v1037_v14 = vmov 5  }
  0x43   : > { %v1196_v4 = vmax.f32 %v307_v2, 0.0  ;;  %338 = vperm.xlu0 %887, %v335_v1   ;;  %v367_v7 = vld [vmem:[#allocation2] sm:$0xf]  ;;  %s1038_s15 = smov 2   ;;  %v1039_v16 = vmov 6   ;;  %v1040_v18 = vmov 7  }
  0x44   : > { %v399_v9 = vld [vmem:[#allocation2] sm:$0xf]  ;;  %s1041_s16 = smov 126   ;;  %v1042_v20 = vmov 8   ;;  %s1043_s19 = smov 98   ;;  %v1230_v36 = vshrl.u32 %v316_v33, 7 }
  0x45   : > { %312 = vrot.lane.b32.xlu1 %v1196_v4, %s1031_s8  ;;  %v1201_v6 = vcombine.high %v1196_v4, %v1196_v4  ;;  %v431_v11 = vld [vmem:[#allocation2] sm:$0xf]  ;;  %s1044_s23 = smov 96   ;;  %s1045_s29 = smov 94   ;;  %v1046_v37 = vmov 839922192  }
  0x46   : > { %v480_v13 = vld [vmem:[#allocation2] sm:$0xf]  ;;  %v445_v38 = vunpack.c.l.s4 %v1046_v37  ;;  %v1234_v40 = vand.u32 127, %v316_v33  ;;  %v1237_v41 = vsub.s32 0, %v1230_v36  ;;  %v1240_v42 = vsub.s32 1, %v1230_v36  ;;  %s680_s17 = scalar_lea.sflag [#allocation4], %s288_s14 }
  0x47   : > { %888 = vset.pattern.permute.xlu0 %v1032_v8  ;;  %v512_v15 = vld [vmem:[#allocation2] sm:$0xf]  ;;  %v353_v43 = vld [vmem:[#allocation5 + $0x1] ss:$8 sm:$0x3]  ;;  %p1374_p4 = scmp.ne.s32.totalorder %s1364_s11, 0 }
  0x48   : > { %370 = vperm.xlu0 %888, %v367_v7   ;;  %v544_v17 = vld [vmem:[#allocation2] sm:$0xf]  ;;  %v321_v44 = vld [vmem:[#allocation5] ss:$8 sm:$0x3]  ;;  %vm349_vm1 = vcmp.lt.s32.totalorder %v1234_v40, 32  ;;  %v446_v45 = vunpack.c.0.s8 %v445_v38  ;;  %v358_v49 = vrot.slane %v353_v43, %v1237_v41  ;;  %v362_v50 = vrot.slane %v353_v43, %v1240_v42 }
  0x49   : > { %314 = vrot.lane.b32.xlu1 %v1201_v6, %s1031_s8  ;;  %v576_v19 = vld [vmem:[#allocation2] sm:$0xf]  ;;  %v385_v48 = vld [vmem:[#allocation5 + $0x2] ss:$8 sm:$0x3]  ;;  %vm318_vm2 = vcmp.lt.s32.totalorder %v1234_v40, 34  ;;  %v326_v51 = vrot.slane %v321_v44, %v1237_v41  ;;  %v330_v52 = vrot.slane %v321_v44, %v1240_v42 }
  0x4a   : > { %v586_v21 = vld [vmem:[%s1355_s2] sm:$0xf]  ;;  %vm381_vm3 = vcmp.lt.s32.totalorder %v1234_v40, 30  ;;  %v417_v55 = vld [vmem:[#allocation5 + $0x3] ss:$8 sm:$0x3]  ;;  %v390_v56 = vrot.slane %v385_v48, %v1237_v41  ;;  %v394_v57 = vrot.slane %v385_v48, %v1240_v42  ;;  %v449_v58 = vsub.s32 %v446_v45, %v1230_v36 }
  0x4b   : > { %v596_v22 = vld [vmem:[%s1357_s4] sm:$0xff]  ;;  %vm413_vm4 = vcmp.lt.s32.totalorder %v1234_v40, 2  ;;  %v466_v7 = vld [vmem:[#allocation5 + $0x5] ss:$8 sm:$0x3]  ;;  %vm462_vm5 = vcmp.lt.s32.totalorder %v1234_v40, 126 }
  0x4c   : > { %347 = vrot.lane.b32.xlu0 %v1201_v6, %s1033_s9  ;;  %vm494_vm6 = vcmp.lt.s32.totalorder %v1234_v40, 98  ;;  %vm526_vm7 = vcmp.lt.s32.totalorder %v1234_v40, 96  ;;  %vm558_vm8 = vcmp.lt.s32.totalorder %v1234_v40, 94  ;;  %s805_s8 = sshll.u32 %s1109_s28, 8 }
  0x4d   : > { %345 = vrot.lane.b32.xlu1 %v1196_v4, %s1033_s9  ;;  %890 = vset.pattern.permute.xlu0 %v1034_v10  ;;  %s694_s9 = sshll.u32 %s1186_s20, 4  ;;  %s695_s9 = int_to_ptr.vmem [resolvable:$true] %s694_s9 }
  0x4e   : > { %s954_s18 = scalar_lea.vmem %s695_s9, 256 }
  0x4f   : > { %p955_p0 = scmp.ne.s32.totalorder %s695_s9, %s954_s18 }
  0x50   : > { %442 = vperm.xlu0 %890, %v431_v11  }
  0x51   : > { %402 = vperm.xlu1 %889, %v399_v9   ;;  %p956_p7 = pnand %p955_p0, %p1374_p4 }
  0x53   : > { %p957_p8 = pneg %p956_p7 }
  0x54   : > { %891 = vset.pattern.permute.xlu0 %v1036_v12 }
  0x55   : > { %377 = vrot.lane.b32.xlu1 %v1196_v4, %s1035_s13  ;;  %434 = vperm.xlu0 %891, %v431_v11  }
  0x56   : > { %897 = vset.pattern.permute.xlu1 %v1029_v3 }
  0x59   : > { %379 = vrot.lane.b32.xlu1 %v1201_v6, %s1035_s13  ;;  %892 = vset.pattern.permute.xlu0 %v1037_v14  ;;  %v498_v14 = vld [vmem:[#allocation5 + $0x6] ss:$8 sm:$0x3] }
  0x5a   : > { %483 = vperm.xlu0 %892, %v480_v13  }
  0x5d   : > { %409 = vrot.lane.b32.xlu1 %v1196_v4, %s1038_s15 }
  0x5e   : > { %893 = vset.pattern.permute.xlu0 %v1039_v16 }
  0x5f   : > { %515 = vperm.xlu0 %893, %v512_v15  }
  0x61   : > { %411 = vrot.lane.b32.xlu1 %v1201_v6, %s1038_s15 }
  0x63   : > { %894 = vset.pattern.permute.xlu0 %v1040_v18  ;;  %v471_v18 = vrot.slane %v466_v7, %v1237_v41 }
  0x64   : > { %547 = vperm.xlu0 %894, %v544_v17  }
  0x65   : > { %458 = vrot.lane.b32.xlu1 %v1196_v4, %s1041_s16 }
  0x68   : > { %895 = vset.pattern.permute.xlu0 %v1042_v20 }
  0x69   : > { %460 = vrot.lane.b32.xlu1 %v1201_v6, %s1041_s16  ;;  %579 = vperm.xlu0 %895, %v576_v19   ;;  %s692_s16 = scalar_lea.hbm %s1358_s5, %s805_s8 }
  0x6d   : > { %490 = vrot.lane.b32.xlu1 %v1196_v4, %s1043_s19  ;;  %896 = vset.pattern.permute.xlu0 %v1029_v3  ;;  %v422_v3 = vrot.slane %v417_v55, %v1237_v41 }
  0x6e   : > { %589 = vperm.xlu0 %896, %v586_v21  }
  0x71   : > { %492 = vrot.lane.b32.xlu1 %v1201_v6, %s1043_s19  ;;  %s1047_s19 = smov [#allocation7]  }
  0x72   : > { %899 = vset.pattern.permute.xlu0 %v1030_v5  ;;  %v426_v5 = vrot.slane %v417_v55, %v1240_v42  ;;  %s958_s21 = sshll.u32 %s1047_s19, 4  ;;  %s959_s21 = int_to_ptr.vmem [resolvable:$false] %s958_s21 }
  0x73   : > { %631 = vperm.xlu0 %899, %v596_v22   ;;  %s960_s22 = scalar_lea.vmem %s959_s21, 512  ;;  %p961_p12 = scmp.lt.s32.totalorder %s695_s9, %s959_s21 }
  0x74   : > { %p962_p1 = scmp.lt.s32.totalorder %s960_s22, %s954_s18 }
  0x75   : > { %522 = vrot.lane.b32.xlu1 %v1196_v4, %s1044_s23 }
  0x76   : > { %p963_p2 = por %p962_p1, %p961_p12 }
  0x77   : > { %901 = vset.pattern.permute.xlu0 %v1036_v12 }
  0x78   : > { %p964_p9 = pnand %p963_p2, %p957_p8 }
  0x79   : > { %524 = vrot.lane.b32.xlu1 %v1201_v6, %s1044_s23 }
  0x7d   : > { %554 = vrot.lane.b32.xlu1 %v1196_v4, %s1045_s29 }
  0x81   : > { %556 = vrot.lane.b32.xlu1 %v1201_v6, %s1045_s29 }
  0x85   : > { %599 = vperm.xlu1 %897, %v596_v22  }
  0x89   : > { %898 = vset.pattern.permute.xlu1 %v1032_v8 }
  0x8a   : > { %615 = vperm.xlu1 %898, %v596_v22  }
  0x8e   : > { %900 = vset.pattern.permute.xlu1 %v1036_v12 }
  0x8f   : > { %647 = vperm.xlu1 %900, %v596_v22  }
  0xb7   : > { %v313_v23 = vpop.permute.xlu1 %312 }
  0xbb   : > { %v315_v24 = vpop.permute.xlu1 %314 }
  0xbc   : > { %v319_v61 = vsel %vm318_vm2, %v313_v23, %v315_v24  ;;  %v320_v62 = vsel %vm318_vm2, %v315_v24, %v313_v23  ;;  %v475_v23 = vrot.slane %v466_v7, %v1240_v42  ;;  %v503_v24 = vrot.slane %v498_v14, %v1237_v41 }
  0xbd   : > { %v333_v10 = vmul.f32 %v326_v51, %v320_v62  ;;  %v334_v11 = vmul.f32 %v330_v52, %v319_v61  ;;  %v562_v62 = vld [vmem:[#allocation5 + $0x10] ss:$8 sm:$0x3] }
  0xbe   : > { %v1226_v27 = vpop.permute.xlu0 %338  ;;  %v571_v7 = vrot.slane %v562_v62, %v1240_v42 }
  0xbf   : > { %v346_v25 = vpop.permute.xlu1 %345 }
  0xc3   : > { %v371_v29 = vpop.permute.xlu0 %370 }
  0xc7   : > { %v348_v32 = vpop.permute.xlu0 %347 }
  0xc8   : > { %v350_v53 = vsel %vm349_vm1, %v346_v25, %v348_v32  ;;  %v351_v54 = vsel %vm349_vm1, %v348_v32, %v346_v25  ;;  %v507_v25 = vrot.slane %v498_v14, %v1240_v42 }
  0xc9   : > { %v365_v1 = vmul.f32 %v358_v49, %v351_v54  ;;  %v366_v2 = vmul.f32 %v362_v50, %v350_v53 }
  0xcb   : > { %v1228_v35 = vpop.permute.xlu0 %442  ;;  %v373_v19 = vmul.f32 %v371_v29, %v365_v1  ;;  %v374_v20 = vmul.f32 %v371_v29, %v366_v2  ;;  %v530_v29 = vld [vmem:[#allocation5 + $0x7] ss:$8 sm:$0x3] }
  0xcc   : > { %v1224_v26 = vpop.permute.xlu1 %402  ;;  %v450_v17 = vrot.slane %v1228_v35, %v449_v58  ;;  %v535_v49 = vrot.slane %v530_v29, %v1237_v41  ;;  %v539_v50 = vrot.slane %v530_v29, %v1240_v42  ;;  %v636_v29 = vsub.s32 2, %v1230_v36 }
  0xce   : > { %v452_v35 = vmul.f32 %v450_v17, %v1196_v4 }
  0xd0   : > { %v378_v28 = vpop.permute.xlu1 %377  ;;  %v435_v46 = vpop.permute.xlu0 %434  ;;  %v454_v54 = vcombine.high %v452_v35, %v452_v35 }
  0xd4   : > { %v380_v30 = vpop.permute.xlu1 %379 }
  0xd5   : > { %v1253_v59 = vpop.permute.xlu0 %483  ;;  %v382_v63 = vsel %vm381_vm3, %v378_v28, %v380_v30  ;;  %v383_v0 = vsel %vm381_vm3, %v380_v30, %v378_v28  ;;  %v341_v28 = vmul.f32 %v1226_v27, %v333_v10  ;;  %v342_v30 = vmul.f32 %v1226_v27, %v334_v11 }
  0xd6   : > { %v397_v12 = vmul.f32 %v390_v56, %v383_v0  ;;  %v398_v13 = vmul.f32 %v394_v57, %v382_v63 }
  0xd7   : > { %v375_v27 = vadd.f32 %v373_v19, %v341_v28  ;;  %v376_v43 = vadd.f32 %v374_v20, %v342_v30 }
  0xd8   : > { %v410_v31 = vpop.permute.xlu1 %409  ;;  %v406_v32 = vmul.f32 %v1224_v26, %v398_v13 }
  0xda   : > { %v516_v16 = vpop.permute.xlu0 %515  ;;  %v408_v52 = vadd.f32 %v406_v32, %v376_v43 }
  0xdc   : > { %v412_v34 = vpop.permute.xlu1 %411 }
  0xdd   : > { %v414_v8 = vsel %vm413_vm4, %v410_v31, %v412_v34  ;;  %v415_v9 = vsel %vm413_vm4, %v412_v34, %v410_v31  ;;  %v405_v31 = vmul.f32 %v1224_v26, %v397_v12 }
  0xde   : > { %v429_v21 = vmul.f32 %v422_v3, %v415_v9  ;;  %v430_v22 = vmul.f32 %v426_v5, %v414_v8  ;;  %v567_v5 = vrot.slane %v562_v62, %v1237_v41 }
  0xdf   : > { %v548_v34 = vpop.permute.xlu0 %547  ;;  %v407_v51 = vadd.f32 %v405_v31, %v375_v27 }
  0xe0   : > { %v1232_v39 = vpop.permute.xlu1 %458  ;;  %v437_v44 = vmul.f32 %v435_v46, %v429_v21  ;;  %v438_v45 = vmul.f32 %v435_v46, %v430_v22 }
  0xe2   : > { %v439_v56 = vadd.f32 %v437_v44, %v407_v51  ;;  %v440_v57 = vadd.f32 %v438_v45, %v408_v52 }
  0xe4   : > { %v461_v47 = vpop.permute.xlu1 %460  ;;  %v580_v61 = vpop.permute.xlu0 %579  ;;  %v456_v8 = vadd.f32 %v452_v35, %v439_v56  ;;  %v457_v9 = vadd.f32 %v454_v54, %v440_v57 }
  0xe5   : > { %v463_v37 = vsel %vm462_vm5, %v1232_v39, %v461_v47  ;;  %v464_v38 = vsel %vm462_vm5, %v461_v47, %v1232_v39 }
  0xe6   : > { %v478_v53 = vmul.f32 %v471_v18, %v463_v37  ;;  %v479_v39 = vmul.f32 %v475_v23, %v464_v38  ;;  %v652_v38 = vsub.s32 3, %v1230_v36 }
  0xe8   : > { %v491_v60 = vpop.permute.xlu1 %490  ;;  %v486_v63 = vmul.f32 %v1253_v59, %v478_v53  ;;  %v487_v0 = vmul.f32 %v1253_v59, %v479_v39 }
  0xe9   : > { %v590_v18 = vpop.permute.xlu0 %589 }
  0xea   : > { %v488_v12 = vadd.f32 %v486_v63, %v456_v8  ;;  %v489_v13 = vadd.f32 %v487_v0, %v457_v9  ;;  %v592_v23 = vmul.f32 %v590_v18, %v1196_v4 }
  0xec   : > { %v493_v15 = vpop.permute.xlu1 %492 }
  0xed   : > { %v495_v26 = vsel %vm494_vm6, %v491_v60, %v493_v15  ;;  %v496_v48 = vsel %vm494_vm6, %v493_v15, %v491_v60 }
  0xee   : > { %v510_v58 = vmul.f32 %v503_v24, %v495_v26  ;;  %v511_v60 = vmul.f32 %v507_v25, %v496_v48  ;;  %v593_v24 = vmul.f32 %v590_v18, %v1201_v6  ;;  %v632_v44 = vpop.permute.xlu0 %631 }
  0xf0   : > { %v523_v33 = vpop.permute.xlu1 %522  ;;  %v518_v10 = vmul.f32 %v516_v16, %v510_v58  ;;  %v519_v11 = vmul.f32 %v516_v16, %v511_v60 }
  0xf2   : > { %v520_v20 = vadd.f32 %v518_v10, %v488_v12  ;;  %v521_v21 = vadd.f32 %v519_v11, %v489_v13 }
  0xf4   : > { %v525_v47 = vpop.permute.xlu1 %524 }
  0xf5   : > { %v527_v55 = vsel %vm526_vm7, %v523_v33, %v525_v47  ;;  %v528_v46 = vsel %vm526_vm7, %v525_v47, %v523_v33 }
  0xf6   : > { %v542_v1 = vmul.f32 %v535_v49, %v527_v55  ;;  %v543_v2 = vmul.f32 %v539_v50, %v528_v46 }
  0xf8   : > { %v555_v3 = vpop.permute.xlu1 %554  ;;  %v550_v14 = vmul.f32 %v548_v34, %v542_v1  ;;  %v551_v15 = vmul.f32 %v548_v34, %v543_v2 }
  0xfa   : > { %v552_v25 = vadd.f32 %v550_v14, %v520_v20  ;;  %v553_v28 = vadd.f32 %v551_v15, %v521_v21 }
  0xfc   : > { %v557_v17 = vpop.permute.xlu1 %556 }
  0xfd   : > { %v559_v59 = vsel %vm558_vm8, %v555_v3, %v557_v17  ;;  %v560_v19 = vsel %vm558_vm8, %v557_v17, %v555_v3 }
  0xfe   : > { %v574_v22 = vmul.f32 %v567_v5, %v559_v59  ;;  %v575_v40 = vmul.f32 %v571_v7, %v560_v19 }
 0x100   : > { %v582_v30 = vmul.f32 %v580_v61, %v574_v22  ;;  %v583_v16 = vmul.f32 %v580_v61, %v575_v40  ;;  %v600_v31 = vpop.permute.xlu1 %599 }
 0x102   : > { %v584_v32 = vadd.f32 %v582_v30, %v552_v25  ;;  %v585_v33 = vadd.f32 %v583_v16, %v553_v28 }
 0x104   : > { %v594_v34 = vsub.f32 %v584_v32, %v592_v23  ;;  %v595_v35 = vsub.f32 %v585_v33, %v593_v24 }
 0x105   : > { %v616_v37 = vpop.permute.xlu1 %615 }
 0x106   : > { %v605_v27 = vrot.slane %v594_v34, %v1237_v41  ;;  %v609_v4 = vrot.slane %v595_v35, %v1237_v41  ;;  %v621_v6 = vrot.slane %v594_v34, %v1240_v42  ;;  %v625_v43 = vrot.slane %v595_v35, %v1240_v42 }
 0x107   : > { %v637_v45 = vrot.slane %v594_v34, %v636_v29  ;;  %v641_v26 = vrot.slane %v595_v35, %v636_v29  ;;  %v653_v52 = vrot.slane %v594_v34, %v652_v38  ;;  %v657_v53 = vrot.slane %v595_v35, %v652_v38 }
 0x108   : > { %v610_v48 = vmul.f32 %v605_v27, %v600_v31  ;;  %v611_v49 = vmul.f32 %v609_v4, %v600_v31  ;;  %v626_v50 = vmul.f32 %v621_v6, %v616_v37  ;;  %v627_v51 = vmul.f32 %v625_v43, %v616_v37 }
 0x109   : > { %v642_v47 = vmul.f32 %v637_v45, %v632_v44  ;;  %v643_v54 = vmul.f32 %v641_v26, %v632_v44 }
 0x10a   : > { %v628_v36 = vadd.f32 %v626_v50, %v610_v48  ;;  %v629_v39 = vadd.f32 %v627_v51, %v611_v49  ;;  %v648_v41 = vpop.permute.xlu1 %647 }
 0x10b   : > { %v658_v55 = vmul.f32 %v653_v52, %v648_v41  ;;  %v659_v42 = vmul.f32 %v657_v53, %v648_v41 }
 0x10c   : > { %v644_v46 = vadd.f32 %v642_v47, %v628_v36  ;;  %v645_v56 = vadd.f32 %v643_v54, %v629_v39 }
 0x10e   : > { %v660_v57 = vadd.f32 %v658_v55, %v644_v46  ;;  %v661_v58 = vadd.f32 %v659_v42, %v645_v56 }
 0x110   : > { %662 = vst [vmem:[%s1186_s20] sm:$0xff] %v660_v57  ;;  %663 = vst [vmem:[%s1186_s20 + $0x8] sm:$0xff] %v661_v58  ;;  %v665_v60 = vadd.f32 %v661_v58, %v660_v57  ;;  %v672_v61 = vmul.f32 %v660_v57, %v660_v57  ;;  %v673_v62 = vmul.f32 %v661_v58, %v661_v58 }
 0x112   : > { %666 = vadd.xlane.f32.xlu1 %v665_v60  ;;  %v674_v63 = vadd.f32 %v673_v62, %v672_v61 }
 0x114   : > { %675 = vadd.xlane.f32.xlu0 %v674_v63 }
 0x115   : > { %967 = shalt.err (!%p964_p9)
}
 0x116   : > { %s968_s28 = scalar_lea.hbm %s692_s16, 256  ;;  %s972_s23 = scalar_lea.hbm %s1358_s5, 512 }
 0x117   : > { %p969_p3 = scmp.ne.s32.totalorder %s692_s16, %s968_s28  ;;  %p973_p6 = scmp.lt.s32.totalorder %s692_s16, %s1358_s5 }
 0x118   : > { %p974_p11 = scmp.lt.s32.totalorder %s972_s23, %s968_s28 }
 0x119   : > { %p970_p10 = pnand %p969_p3, %p1374_p4 }
 0x11a   : > { %p975_p13 = por %p974_p11, %p973_p6 }
 0x11b   : > { %p971_p5 = pneg %p970_p10 }
 0x11d   : > { %p976_p0 = pnand %p975_p13, %p971_p5 }
 0x11f   : > { %979 = shalt.err (!%p976_p0)
}
 0x120   : > { %814 = dma.vmem_to_hbm [thread:$0]  (%p1374_p4), %s695_s9, 256, %s692_s16, %s680_s17   ;;  %v664_v0 = vld [vmem:[%s1359_s6] sm:$0xff]  ;;  %vm669_vm9 = vcmask 7168  }
 0x121   : > { %v671_v2 = vld [vmem:[%s1360_s7] sm:$0xff] }
 0x19b   : > { %v667_v1 = vpop.xlane.xlu1 %666 }
 0x19c   : > { %v668_v3 = vadd.f32 %v667_v1, %v664_v0 }
 0x19d   : > { %v676_v5 = vpop.xlane.xlu0 %675 }
 0x19e   : > { %670 = vst.msk [vmem:[%s1359_s6] sm:$0xff] %vm669_vm9, %v668_v3  ;;  %v677_v7 = vadd.f32 %v676_v5, %v671_v2 }
 0x1a0   : > { %678 = vst.msk [vmem:[%s1360_s7] sm:$0xff] %vm669_vm9, %v677_v7 }
 0x1a1 PF: > { %p831_p4 = scmp.ge.s32.totalorder %s1022_s27, 2  ;;  %s718_s9 = sand.u32 1, %s1010_s24  }
 0x1a2   : > { %p1375_p7 = scmp.ne.s32.totalorder %s1365_s12, 0  ;;  %s719_s16 = scalar_lea.sflag [#allocation4], %s718_s9 }
 0x1a4   : > { %p824_p8 = pnand %p831_p4, %p1375_p7 }
 0x1a6   : > { %p825_p12 = pneg %p824_p8 }
 0x1a8   : > { %1005 = dma.done.wait (%p825_p12), %s719_s16, 256  }
 0x1a9   : > { %1007 = vsyncadd (%p825_p12), %s719_s16, 4294967040  ;;  %p20_p1 = scmp.ge.s32.totalorder %s1113_s30, 4   ;;  %s1376_s24 = smov %s1014_s25 }
 0x1aa   : > { %s1377_s25 = smov %s1018_s26  ;;  %s1378_s26 = smov %s1124_s10 }
 0x1ab   : > { %s1379_s27 = smov %s1113_s30  ;;  %22 = sbr.rel (!%p20_p1) target bundleno = 5 (0x5), region = 111 }
 0x1b0   :  { %724 = vsyncpa [#allocation3], 1 }
 0x1b1   :  { %726 = vsyncpa [#allocation3 + $0x1], 1 }
 0x1b2   :  { %727 = vsyncpa [#allocation6], 1 }
 0x1b3   :  { %728 = vsyncpa [#allocation4], 1 }
 0x1b4   :  { %730 = vsyncpa [#allocation4 + $0x1], 1 }

</bundles_post_ra>
